<compile_context>
chip_gen: v5e
topology: v5e:2x2
jax: 0.10.0
libtpu: 0.0.40
codegen_flags: <defaults>
</compile_context>

<pallas_src>
import jax
import jax.numpy as jnp
from jax.experimental import pallas as pl
from jax.experimental.pallas import tpu as pltpu


def mlp_kernel(x_ref, w1_ref, b1_ref, w2_ref, b2_ref, w3_ref, b3_ref, o_ref):
    # x_ref: (8, TB); w*: (out, in); b*: (out, 1) broadcast across lanes.
    x = x_ref[...]
    # layer 1: (6,8) @ (8,TB) -> (6,TB), + bias, relu
    h = jnp.dot(w1_ref[...], x, preferred_element_type=jnp.float32)
    h = jnp.maximum(h + b1_ref[...], 0.0)
    # layer 2: (4,6) @ (6,TB) -> (4,TB), + bias, relu
    h = jnp.dot(w2_ref[...], h, preferred_element_type=jnp.float32)
    h = jnp.maximum(h + b2_ref[...], 0.0)
    # layer 3: (1,4) @ (4,TB) -> (1,TB), + bias, relu
    h = jnp.dot(w3_ref[...], h, preferred_element_type=jnp.float32)
    h = jnp.maximum(h + b3_ref[...], 0.0)
    o_ref[...] = h.astype(o_ref.dtype)


def mlp_forward(x, params, *, tb=512):
    """x: (B, 8) float32 -> (B, 1) float32."""
    w1, b1, w2, b2, w3, b3 = params
    B = x.shape[0]

    # Batch on lanes.
    xt = x.T.astype(jnp.float32)          # (8, B)

    if B <= tb:
        # Single full block (always legal regardless of divisibility).
        TB, Bp = B, B
    else:
        # Tile the batch; pad to a multiple of the tile so blocks stay
        # (8,128)-aligned and lane-dense.
        TB = tb
        Bp = pl.cdiv(B, TB) * TB
        xt = jnp.pad(xt, ((0, 0), (0, Bp - B)))

    grid = (Bp // TB,)

    const = lambda i: (0, 0)              # weights/biases: same block every step

    out_t = pl.pallas_call(
        mlp_kernel,
        out_shape=jax.ShapeDtypeStruct((1, Bp), jnp.float32),
        grid=grid,
        in_specs=[
            pl.BlockSpec((8, TB), lambda i: (0, i)),   # x tile, lane-dense
            pl.BlockSpec(w1.shape, const),
            pl.BlockSpec(b1.shape, const),
            pl.BlockSpec(w2.shape, const),
            pl.BlockSpec(b2.shape, const),
            pl.BlockSpec(w3.shape, const),
            pl.BlockSpec(b3.shape, const),
        ],
        out_specs=pl.BlockSpec((1, TB), lambda i: (0, i)),
        compiler_params=pltpu.CompilerParams(
            dimension_semantics=("parallel",)),        # 2x on v7x megacore
    )(xt, w1, b1, w2, b2, w3, b3)

    # Back to the PyTorch output convention (B, 1).
    return out_t[:, :B].T


def init_params(key):
    # Deterministic init mimicking torch.nn.Linear default
    # (uniform +/- 1/sqrt(fan_in)); weights stored PyTorch-style (out, in).
    dims = [(8, 6), (6, 4), (4, 1)]
    params = []
    for fan_in, fan_out in dims:
        key, kw, kb = jax.random.split(key, 3)
        bound = 1.0 / (fan_in ** 0.5)
        w = jax.random.uniform(kw, (fan_out, fan_in), jnp.float32, -bound, bound)
        b = jax.random.uniform(kb, (fan_out, 1), jnp.float32, -bound, bound)
        params += [w, b]
    return params


def reference_forward(x, params):
    w1, b1, w2, b2, w3, b3 = params
    h = jnp.maximum(x @ w1.T + b1[:, 0], 0.0)
    h = jnp.maximum(h @ w2.T + b2[:, 0], 0.0)
    h = jnp.maximum(h @ w3.T + b3[:, 0], 0.0)
    return h


if __name__ == "__main__":
    key = jax.random.PRNGKey(0)
    key, kx = jax.random.split(key)
    params = init_params(key)

    # Small shape consistent with the module: batch=8, in_features=8.
    B = 8
    x = jax.random.normal(kx, (B, 8), jnp.float32)
    out = jax.block_until_ready(mlp_forward(x, params))
    ref = reference_forward(x, params)
    assert out.shape == (B, 1), out.shape
    assert jnp.allclose(out, ref, atol=1e-5, rtol=1e-5)

    # Also exercise the tiled / pipelined path (grid > 1, with padding).
    B2 = 1280
    x2 = jax.random.normal(jax.random.PRNGKey(1), (B2, 8), jnp.float32)
    out2 = jax.block_until_ready(mlp_forward(x2, params))
    ref2 = reference_forward(x2, params)
    assert out2.shape == (B2, 1), out2.shape
    assert jnp.allclose(out2, ref2, atol=1e-5, rtol=1e-5)

    print("KERNEL_OK")
</pallas_src>

<mosaic_0001>
module attributes {stable_mosaic.version = 11 : i64} {
  func.func @mlp_kernel(%arg0: i32, %arg1: memref<8x8xf32, #tpu.memory_space<vmem>>, %arg2: memref<6x8xf32, #tpu.memory_space<vmem>>, %arg3: memref<6x1xf32, #tpu.memory_space<vmem>>, %arg4: memref<4x6xf32, #tpu.memory_space<vmem>>, %arg5: memref<4x1xf32, #tpu.memory_space<vmem>>, %arg6: memref<1x4xf32, #tpu.memory_space<vmem>>, %arg7: memref<1x1xf32, #tpu.memory_space<vmem>>, %arg8: memref<1x8xf32, #tpu.memory_space<vmem>>) attributes {dimension_semantics = [#tpu.dimension_semantics<parallel>], iteration_bounds = array<i64: 1>, scalar_prefetch = 0 : i64, scratch_operands = 0 : i64, tpu.core_type = #tpu.core_type<tc>, window_params = [{transform_indices = @transform_0, window_bounds = array<i64: 8, 8>}, {pipeline_mode = #tpu.pipeline_mode<synchronous>, transform_indices = @transform_1, window_bounds = array<i64: 6, 8>}, {pipeline_mode = #tpu.pipeline_mode<synchronous>, transform_indices = @transform_2, window_bounds = array<i64: 6, 1>}, {pipeline_mode = #tpu.pipeline_mode<synchronous>, transform_indices = @transform_3, window_bounds = array<i64: 4, 6>}, {pipeline_mode = #tpu.pipeline_mode<synchronous>, transform_indices = @transform_4, window_bounds = array<i64: 4, 1>}, {pipeline_mode = #tpu.pipeline_mode<synchronous>, transform_indices = @transform_5, window_bounds = array<i64: 1, 4>}, {pipeline_mode = #tpu.pipeline_mode<synchronous>, transform_indices = @transform_6, window_bounds = array<i64: 1, 1>}, {transform_indices = @transform_7, window_bounds = array<i64: 1, 8>}]} {
    %c0 = arith.constant 0 : index
    %c0_0 = arith.constant 0 : index
    %0 = vector.load %arg1[%c0, %c0_0] : memref<8x8xf32, #tpu.memory_space<vmem>>, vector<8x8xf32>
    %c0_1 = arith.constant 0 : index
    %c0_2 = arith.constant 0 : index
    %1 = vector.load %arg2[%c0_1, %c0_2] : memref<6x8xf32, #tpu.memory_space<vmem>>, vector<6x8xf32>
    %cst = arith.constant dense<0.000000e+00> : vector<6x8xf32>
    %2 = tpu.matmul %1, %0, %cst {dimension_numbers = #tpu.dot_dimension_numbers<[1], [0], [0], [1], [0, 0, 1, 1], [], []>} : vector<6x8xf32>, vector<8x8xf32>, vector<6x8xf32> -> vector<6x8xf32>
    %c0_3 = arith.constant 0 : index
    %c0_4 = arith.constant 0 : index
    %3 = vector.load %arg3[%c0_3, %c0_4] : memref<6x1xf32, #tpu.memory_space<vmem>>, vector<6x1xf32>
    %4 = vector.broadcast %3 : vector<6x1xf32> to vector<6x8xf32>
    %5 = arith.addf %2, %4 : vector<6x8xf32>
    %cst_5 = arith.constant 0.000000e+00 : f32
    %6 = vector.broadcast %cst_5 : f32 to vector<6x8xf32>
    %7 = arith.maximumf %5, %6 : vector<6x8xf32>
    %c0_6 = arith.constant 0 : index
    %c0_7 = arith.constant 0 : index
    %8 = vector.load %arg4[%c0_6, %c0_7] : memref<4x6xf32, #tpu.memory_space<vmem>>, vector<4x6xf32>
    %cst_8 = arith.constant dense<0.000000e+00> : vector<4x8xf32>
    %9 = tpu.matmul %8, %7, %cst_8 {dimension_numbers = #tpu.dot_dimension_numbers<[1], [0], [0], [1], [0, 0, 1, 1], [], []>} : vector<4x6xf32>, vector<6x8xf32>, vector<4x8xf32> -> vector<4x8xf32>
    %c0_9 = arith.constant 0 : index
    %c0_10 = arith.constant 0 : index
    %10 = vector.load %arg5[%c0_9, %c0_10] : memref<4x1xf32, #tpu.memory_space<vmem>>, vector<4x1xf32>
    %11 = vector.broadcast %10 : vector<4x1xf32> to vector<4x8xf32>
    %12 = arith.addf %9, %11 : vector<4x8xf32>
    %cst_11 = arith.constant 0.000000e+00 : f32
    %13 = vector.broadcast %cst_11 : f32 to vector<4x8xf32>
    %14 = arith.maximumf %12, %13 : vector<4x8xf32>
    %c0_12 = arith.constant 0 : index
    %c0_13 = arith.constant 0 : index
    %15 = vector.load %arg6[%c0_12, %c0_13] : memref<1x4xf32, #tpu.memory_space<vmem>>, vector<1x4xf32>
    %cst_14 = arith.constant dense<0.000000e+00> : vector<1x8xf32>
    %16 = tpu.matmul %15, %14, %cst_14 {dimension_numbers = #tpu.dot_dimension_numbers<[1], [0], [0], [1], [0, 0, 1, 1], [], []>} : vector<1x4xf32>, vector<4x8xf32>, vector<1x8xf32> -> vector<1x8xf32>
    %c0_15 = arith.constant 0 : index
    %c0_16 = arith.constant 0 : index
    %17 = vector.load %arg7[%c0_15, %c0_16] : memref<1x1xf32, #tpu.memory_space<vmem>>, vector<1x1xf32>
    %18 = vector.broadcast %17 : vector<1x1xf32> to vector<1x8xf32>
    %19 = arith.addf %16, %18 : vector<1x8xf32>
    %cst_17 = arith.constant 0.000000e+00 : f32
    %20 = vector.broadcast %cst_17 : f32 to vector<1x8xf32>
    %21 = arith.maximumf %19, %20 : vector<1x8xf32>
    %c0_18 = arith.constant 0 : index
    %c0_19 = arith.constant 0 : index
    %22 = vector.load %arg8[%c0_18, %c0_19] : memref<1x8xf32, #tpu.memory_space<vmem>>, vector<1x8xf32>
    tpu.vector_store %arg8[%c0_18, %c0_19], %21 {strides = array<i32>} : memref<1x8xf32, #tpu.memory_space<vmem>>, vector<1x8xf32>,
    return
  }
  func.func @transform_0(%arg0: i32) -> (i32, i32) {
    %c0_i32 = arith.constant 0 : i32
    %c0_i32_0 = arith.constant 0 : i32
    return %c0_i32, %arg0 : i32, i32
  }
  func.func @transform_1(%arg0: i32) -> (i32, i32) {
    %c0_i32 = arith.constant 0 : i32
    %c0_i32_0 = arith.constant 0 : i32
    %c0_i32_1 = arith.constant 0 : i32
    return %c0_i32, %c0_i32_0 : i32, i32
  }
  func.func @transform_2(%arg0: i32) -> (i32, i32) {
    %c0_i32 = arith.constant 0 : i32
    %c0_i32_0 = arith.constant 0 : i32
    %c0_i32_1 = arith.constant 0 : i32
    return %c0_i32, %c0_i32_0 : i32, i32
  }
  func.func @transform_3(%arg0: i32) -> (i32, i32) {
    %c0_i32 = arith.constant 0 : i32
    %c0_i32_0 = arith.constant 0 : i32
    %c0_i32_1 = arith.constant 0 : i32
    return %c0_i32, %c0_i32_0 : i32, i32
  }
  func.func @transform_4(%arg0: i32) -> (i32, i32) {
    %c0_i32 = arith.constant 0 : i32
    %c0_i32_0 = arith.constant 0 : i32
    %c0_i32_1 = arith.constant 0 : i32
    return %c0_i32, %c0_i32_0 : i32, i32
  }
  func.func @transform_5(%arg0: i32) -> (i32, i32) {
    %c0_i32 = arith.constant 0 : i32
    %c0_i32_0 = arith.constant 0 : i32
    %c0_i32_1 = arith.constant 0 : i32
    return %c0_i32, %c0_i32_0 : i32, i32
  }
  func.func @transform_6(%arg0: i32) -> (i32, i32) {
    %c0_i32 = arith.constant 0 : i32
    %c0_i32_0 = arith.constant 0 : i32
    %c0_i32_1 = arith.constant 0 : i32
    return %c0_i32, %c0_i32_0 : i32, i32
  }
  func.func @transform_7(%arg0: i32) -> (i32, i32) {
    %c0_i32 = arith.constant 0 : i32
    %c0_i32_0 = arith.constant 0 : i32
    return %c0_i32, %arg0 : i32, i32
  }
}

</mosaic_0001>

<bundles_post_ra>
// kernel: tpu_custom_call.1
= control target key start
LH: loop header
LB: loop body
LE: loop exit
PB: predicated region body
PF: predicated region fallthrough
CT: control target
= control target key end

     0   :  { %s297_s0 = inlined_call_operand.vmem [shape: f32[8,8], index: 0, kind: input, shape index: {}]   ;;  %s298_s1 = inlined_call_operand.hbm [shape: f32[6,8], index: 1, kind: input, shape index: {}]   ;;  %s299_s2 = inlined_call_operand.vmem [shape: f32[6,1], index: 2, kind: input, shape index: {}]   ;;  %s300_s3 = inlined_call_operand.vmem [shape: f32[4,6], index: 3, kind: input, shape index: {}]   ;;  %s301_s4 = inlined_call_operand.vmem [shape: f32[4,1], index: 4, kind: input, shape index: {}]   ;;  %s302_s5 = inlined_call_operand.vmem [shape: f32[1,4], index: 5, kind: input, shape index: {}]   ;;  %s303_s6 = inlined_call_operand.<no memory space> [shape: f32[1,1], index: 6, kind: input, shape index: {}]   ;;  %s304_s7 = inlined_call_operand.hbm [shape: f32[1,8], index: 7, kind: output, shape index: {}]  }
   0x1   :  { %v12_v0 = vstv %s303_s6 }
   0x2   :  { %13 = vst [vmem:[#allocation2] sm:$0x1] %v12_v0 }
   0x3   :  { %14 = vsyncpa [#allocation4], 0 }
   0x4   :  { %15 = vsyncpa [#allocation5], 0  ;;  %s23_s28 = sshll.u32 %s298_s1, 4  ;;  %s230_s29 = smov [#allocation3]   ;;  %s24_s28 = int_to_ptr.hbm [resolvable:$true] %s23_s28 }
   0x5   :  { %s25_s30 = sshll.u32 %s230_s29, 4  ;;  %s26_s30 = int_to_ptr.vmem [resolvable:$true] %s25_s30 }
   0x6   :  { %28 = dma.hbm_to_vmem [thread:$0]  %s24_s28, 128, %s26_s30, [#allocation4]  }
   0x7   :  { %226 = dma.done.wait [#allocation4], 128  }
   0x8   :  { %227 = vsyncadd [#allocation4], 4294967168  ;;  %v231_v1 = vmov 0   ;;  %vm51_vm0 = vcmask 64512   ;;  %v43_v2 = vld [vmem:[%s297_s0] sm:$0xff]  ;;  %vm87_vm1 = vcmask 1045504  }
   0x9   :  { %176 = vset.pattern.permute.xlu0 %v231_v1  ;;  %177 = vset.pattern.permute.xlu1 %v231_v1  ;;  %v44_v3 = vld [vmem:[#allocation3] sm:$0x3f]  ;;  %vm83_vm2 = vcmask 48128   ;;  %v113_v11 = vld [vmem:[#allocation2] sm:$0x1]  ;;  %vm124_vm3 = vcmask 1043456  }
   0xa   :  { %v45_v4 = vld [vmem:[%s299_s2] sm:$0x3f]  ;;  %70 = vmatpush.msra.mxu0 %v43_v2  ;;  %116 = vperm.xlu1 %177, %v113_v11   ;;  %vm120_vm4 = vcmask 31744   ;;  %s158_s16 = sshll.u32 %s304_s7, 4  ;;  %vm149_vm5 = vcmask 57344   ;;  %s159_s16 = int_to_ptr.hbm [resolvable:$true] %s158_s16 }
   0xb   :  { %48 = vperm.xlu0 %176, %v45_v4   ;;  %168 = vmatmul.msk.f32.vlgmr.msra.gmra.mxu0 %vm51_vm0, %v44_v3  ;;  %v77_v5 = vld [vmem:[%s301_s4] sm:$0xf] }
   0xc   :  { %v76_v10 = vld [vmem:[%s300_s3] sm:$0xf]  ;;  %s232_s3 = smov [#allocation6]  }
   0xd   :  { %v112_v16 = vld [vmem:[%s302_s5] sm:$0x1]  ;;  %s156_s13 = sshll.u32 %s232_s3, 4  ;;  %s157_s13 = int_to_ptr.vmem [resolvable:$true] %s156_s13 }
  0x13   :  { %80 = vperm.xlu0 %176, %v77_v5  }
  0x7c   :  { %v117_v17 = vpop.permute.xlu1 %116 }
  0x7d   :  { %v49_v6 = vpop.permute.xlu0 %48  ;;  %v119_v18 = vperm.slane %v117_v17, 0 }
  0x85   :  { %v81_v12 = vpop.permute.xlu0 %80 }
  0x88   :  { %v72_v7 = vpop.f32.mrf.mxu0 }
  0x89   :  { %v73_v8 = vadd.f32 %v72_v7, %v49_v6 }
  0x8b   :  { %v75_v9 = vmax.f32 %v73_v8, 0.0 }
  0x8d   :  { %169 = vmatpush.msk.msra.mxu1 %vm87_vm1, %v75_v9 }
  0x8e   :  { %170 = vmatmul.msk.f32.vlgmr.msra.gmra.mxu1 %vm83_vm2, %v76_v10 }
 0x10b   :  { %v108_v13 = vpop.f32.mrf.mxu1 }
 0x10c   :  { %v109_v14 = vadd.f32 %v108_v13, %v81_v12 }
 0x10e   :  { %v111_v15 = vmax.f32 %v109_v14, 0.0 }
 0x110   :  { %171 = vmatpush.msk.msra.mxu2 %vm124_vm3, %v111_v15 }
 0x111   :  { %172 = vmatmul.msk.f32.vlgmr.msra.gmra.mxu2 %vm120_vm4, %v112_v16 }
 0x194   :  { %v145_v19 = vpop.f32.mrf.mxu2 }
 0x195   :  { %v146_v20 = vadd.f32 %v145_v19, %v119_v18 }
 0x197   :  { %v148_v21 = vmax.f32 %v146_v20, 0.0 }
 0x199   :  { %150 = vst.msk [vmem:[#allocation6] sm:$0x1] %vm149_vm5, %v148_v21 }
 0x19a   :  { %161 = dma.vmem_to_hbm [thread:$0]  %s157_s13, 16, %s159_s16, [#allocation5]  }
 0x19b   :  { %228 = dma.done.wait [#allocation5], 16  }
 0x19c   :  { %229 = vsyncadd [#allocation5], 4294967280 }
 0x19d   :  { %166 = vsyncpa [#allocation4], 1 }
 0x19e   :  { %167 = vsyncpa [#allocation5], 1 }

</bundles_post_ra>
